<compile_context>
chip_gen: v5e
topology: v5e:2x2
jax: 0.10.0
libtpu: 0.0.40
codegen_flags: <defaults>
</compile_context>

<pallas_src>
import math

import jax
import jax.numpy as jnp
from jax.experimental import pallas as pl
from jax.experimental.pallas import tpu as pltpu


# ---------------------------------------------------------------------------
# Kernel 1: tiled aggregation + node projection   axw = (A @ x) @ W_node
#   grid = (N // TM, N // TK);  A tile (TM, TK) bf16, x tile (TK, Fn) bf16,
#   f32 accumulator (TM, Fn); at the last K step apply W_node and store.
# ---------------------------------------------------------------------------
def aggregate_project_kernel(a_ref, x_ref, wn_ref, axw_ref, acc_ref):
    k = pl.program_id(1)

    @pl.when(k == 0)
    def _():
        acc_ref[...] = jnp.zeros_like(acc_ref)

    # bf16 x bf16 -> f32 accumulation on the MXU.
    acc_ref[...] += jnp.dot(a_ref[...], x_ref[...],
                            preferred_element_type=jnp.float32)

    @pl.when(k == pl.num_programs(1) - 1)
    def _():
        # Project the aggregated rows: (TM, Fn) @ (Fn, C), f32.
        axw_ref[...] = jnp.dot(acc_ref[...], wn_ref[...],
                               preferred_element_type=jnp.float32)
    # TODO(synk): nn.Dropout is identity at inference; training-mode dropout
    # (random masking) is intentionally not reproduced.


# ---------------------------------------------------------------------------
# Kernel 2: fused edge projection + gather + ComplEx scoring, tiled over E.
#   Per grid step (edge tile of TE edges):
#     ew    = edge_attr_tile @ W_edge                      (bf16 MXU, f32 acc)
#     heads = onehot(head_idx) @ axw   (exact in-kernel gather via MXU)
#     tails = onehot(tail_idx) @ axw
#     score = sigmoid( ones(1,C) . (heads*ew*tails)^T )    -> lane-dense (1,TE)
# ---------------------------------------------------------------------------
def edge_score_kernel(eidx_ref, ea_ref, we_ref, axw_ref, ew_ref, sc_ref):
    te = ea_ref.shape[0]
    n = axw_ref.shape[0]
    c = axw_ref.shape[1]

    # Edge projection (written out as the ew output of the module).
    ew = jnp.dot(ea_ref[...], we_ref[...], preferred_element_type=jnp.float32)
    ew_ref[...] = ew

    # In-kernel gather of head/tail rows of axw via exact one-hot matmuls.
    axw = axw_ref[...]
    node_ids = jax.lax.broadcasted_iota(jnp.int32, (te, n), 1)
    h_idx = eidx_ref[:, 0:1]                       # (TE, 1) int32
    t_idx = eidx_ref[:, 1:2]                       # (TE, 1) int32
    oh_h = (node_ids == h_idx).astype(jnp.float32)  # (TE, N) exact 0/1
    oh_t = (node_ids == t_idx).astype(jnp.float32)
    heads = jnp.dot(oh_h, axw, preferred_element_type=jnp.float32)  # (TE, C)
    tails = jnp.dot(oh_t, axw, preferred_element_type=jnp.float32)  # (TE, C)

    # ComplEx with zero imaginary parts == real triple product.
    prod = heads * ew * tails                      # (TE, C) f32
    ones_c = jnp.ones((1, c), jnp.float32)
    # Contract over C of both operands -> (1, TE): lane-dense output row,
    # no (TE,1) masked stores and no transpose/reshape in-kernel.
    raw = jax.lax.dot_general(
        ones_c, prod,
        dimension_numbers=(((1,), (1,)), ((), ())),
        preferred_element_type=jnp.float32)        # (1, TE)
    sc_ref[...] = jax.nn.sigmoid(raw)


def gnn_forward(adj, x, edge_index, edge_attr, w_node, w_edge,
                *, tm=128, tk=128, te=128):
    N, Fn = x.shape
    E, Fe = edge_attr.shape
    C = w_node.shape[1]
    assert N % tm == 0 and N % tk == 0, "N must be divisible by the row/K tiles"
    assert E % te == 0, "E must be divisible by the edge tile"
    assert Fn % 128 == 0 and Fe % 128 == 0 and C % 128 == 0, \
        "feature dims must be lane-aligned (pad to 128 for general shapes)"

    # bf16 MXU inputs (adjacency 0/1 is exactly representable), f32 accumulation.
    adj_bf = adj.astype(jnp.bfloat16)
    x_bf = x.astype(jnp.bfloat16)
    ea_bf = edge_attr.astype(jnp.bfloat16)
    we_bf = w_edge.astype(jnp.bfloat16)
    wn_f32 = w_node.astype(jnp.float32)

    vmem_limit = 32 * 1024 * 1024  # explicit; safe for v5e/v6e/v7x

    # ---- kernel 1: axw = (A @ x) @ W_node, tiled + pipelined -------------
    axw = pl.pallas_call(
        aggregate_project_kernel,
        out_shape=jax.ShapeDtypeStruct((N, C), jnp.float32),
        grid_spec=pltpu.PrefetchScalarGridSpec(
            num_scalar_prefetch=0,
            grid=(N // tm, N // tk),
            in_specs=[
                pl.BlockSpec((tm, tk), lambda i, k: (i, k)),   # A tile
                pl.BlockSpec((tk, Fn), lambda i, k: (k, 0)),   # x tile
                pl.BlockSpec((Fn, C), lambda i, k: (0, 0)),    # W_node resident
            ],
            out_specs=pl.BlockSpec((tm, C), lambda i, k: (i, 0)),
            scratch_shapes=[pltpu.VMEM((tm, Fn), jnp.float32)],
        ),
        compiler_params=pltpu.CompilerParams(
            dimension_semantics=("parallel", "arbitrary"),
            vmem_limit_bytes=vmem_limit),
    )(adj_bf, x_bf, wn_f32)

    # ---- kernel 2: fused ew + gather + ComplEx scoring, tiled over E ------
    eidx_t = edge_index.T.astype(jnp.int32)        # (E, 2): [head, tail] rows

    ew, scores_row = pl.pallas_call(
        edge_score_kernel,
        out_shape=(jax.ShapeDtypeStruct((E, C), jnp.float32),
                   jax.ShapeDtypeStruct((1, E), jnp.float32)),
        grid_spec=pltpu.PrefetchScalarGridSpec(
            num_scalar_prefetch=0,
            grid=(E // te,),
            in_specs=[
                pl.BlockSpec((te, 2), lambda e: (e, 0)),       # edge indices
                pl.BlockSpec((te, Fe), lambda e: (e, 0)),      # edge_attr tile
                pl.BlockSpec((Fe, C), lambda e: (0, 0)),       # W_edge resident
                pl.BlockSpec((N, C), lambda e: (0, 0)),        # axw resident
            ],
            out_specs=(pl.BlockSpec((te, C), lambda e: (e, 0)),
                       pl.BlockSpec((1, te), lambda e: (0, e))),
        ),
        compiler_params=pltpu.CompilerParams(
            dimension_semantics=("parallel",),
            vmem_limit_bytes=vmem_limit),
    )(eidx_t, ea_bf, we_bf, axw)

    return axw, ew, scores_row[0]


# ---------------------------------------------------------------------------
# Deterministic parameter init (xavier_uniform, like reset_parameters()).
# ---------------------------------------------------------------------------
def xavier_uniform(key, shape):
    fan_in, fan_out = shape
    bound = math.sqrt(6.0 / (fan_in + fan_out))
    return jax.random.uniform(key, shape, jnp.float32, -bound, bound)


if __name__ == "__main__":
    # Small, lane-aligned synthetic shapes (multiples of 8 / 128).
    N, F_NODE, F_EDGE, C, E = 256, 128, 128, 128, 256

    key = jax.random.PRNGKey(0)
    k_adj, k_x, k_ea, k_ei, k_wn, k_we = jax.random.split(key, 6)

    # Dense adjacency (reference uses torch.sparse.mm; dense matmul is
    # numerically identical, values 0/1 are exact in bf16).
    adj = (jax.random.uniform(k_adj, (N, N)) < 0.3).astype(jnp.float32)
    x = jax.random.normal(k_x, (N, F_NODE), jnp.float32)
    edge_attr = jax.random.normal(k_ea, (E, F_EDGE), jnp.float32)
    edge_index = jax.random.randint(k_ei, (2, E), 0, N, jnp.int32)

    w_node = xavier_uniform(k_wn, (F_NODE, C))
    w_edge = xavier_uniform(k_we, (F_EDGE, C))

    axw1, ew1, scores = gnn_forward(adj, x, edge_index, edge_attr,
                                    w_node, w_edge)
    jax.block_until_ready((axw1, ew1, scores))

    # ---- pure-JAX reference checks ---------------------------------------
    # Match the MXU path: bf16-quantized inputs, f32 accumulation.
    x_q = x.astype(jnp.bfloat16).astype(jnp.float32)
    ea_q = edge_attr.astype(jnp.bfloat16).astype(jnp.float32)
    we_q = w_edge.astype(jnp.bfloat16).astype(jnp.float32)

    axw_ref = (adj @ x_q) @ w_node
    ew_ref = ea_q @ we_q
    assert jnp.allclose(axw1, axw_ref, atol=1e-3, rtol=1e-3)
    assert jnp.allclose(ew1, ew_ref, atol=1e-3, rtol=1e-3)

    # Scoring stage checked against the kernel's own (already validated)
    # axw/ew, so only the fused gather + product + reduce + sigmoid differs.
    sc_ref = jax.nn.sigmoid(
        jnp.sum(axw1[edge_index[0]] * ew1 * axw1[edge_index[1]], axis=-1))
    assert jnp.allclose(scores, sc_ref, atol=1e-3, rtol=1e-3)

    print("KERNEL_OK")
</pallas_src>

<mosaic_0001>
module attributes {stable_mosaic.version = 11 : i64} {
  func.func @aggregate_project_kernel(%arg0: i32, %arg1: i32, %arg2: memref<128x128xbf16, #tpu.memory_space<vmem>>, %arg3: memref<128x128xbf16, #tpu.memory_space<vmem>>, %arg4: memref<128x128xf32, #tpu.memory_space<vmem>>, %arg5: memref<128x128xf32, #tpu.memory_space<vmem>>, %arg6: memref<128x128xf32, #tpu.memory_space<vmem>>) attributes {dimension_semantics = [#tpu.dimension_semantics<parallel>, #tpu.dimension_semantics<arbitrary>], iteration_bounds = array<i64: 2, 2>, scalar_prefetch = 0 : i64, scratch_operands = 1 : i64, tpu.core_type = #tpu.core_type<tc>, window_params = [{transform_indices = @transform_0, window_bounds = array<i64: 128, 128>}, {transform_indices = @transform_1, window_bounds = array<i64: 128, 128>}, {pipeline_mode = #tpu.pipeline_mode<synchronous>, transform_indices = @transform_2, window_bounds = array<i64: 128, 128>}, {transform_indices = @transform_3, window_bounds = array<i64: 128, 128>}]} {
    %c0_i32 = arith.constant 0 : i32
    %0 = arith.cmpi eq, %arg1, %c0_i32 : i32
    %1 = arith.extui %0 : i1 to i32
    %c0_i32_0 = arith.constant 0 : i32
    %2 = arith.cmpi ne, %1, %c0_i32_0 : i32
    scf.if %2 {
      %cst_9 = arith.constant 0.000000e+00 : f32
      %12 = vector.broadcast %cst_9 : f32 to vector<128x128xf32>
      %c0_10 = arith.constant 0 : index
      %c0_11 = arith.constant 0 : index
      %13 = vector.load %arg6[%c0_10, %c0_11] : memref<128x128xf32, #tpu.memory_space<vmem>>, vector<128x128xf32>
      tpu.vector_store %arg6[%c0_10, %c0_11], %12 {strides = array<i32>} : memref<128x128xf32, #tpu.memory_space<vmem>>, vector<128x128xf32>,
    } else {
    }
    %c0 = arith.constant 0 : index
    %c0_1 = arith.constant 0 : index
    %3 = vector.load %arg6[%c0, %c0_1] : memref<128x128xf32, #tpu.memory_space<vmem>>, vector<128x128xf32>
    %c0_2 = arith.constant 0 : index
    %c0_3 = arith.constant 0 : index
    %4 = vector.load %arg2[%c0_2, %c0_3] : memref<128x128xbf16, #tpu.memory_space<vmem>>, vector<128x128xbf16>
    %c0_4 = arith.constant 0 : index
    %c0_5 = arith.constant 0 : index
    %5 = vector.load %arg3[%c0_4, %c0_5] : memref<128x128xbf16, #tpu.memory_space<vmem>>, vector<128x128xbf16>
    %cst = arith.constant dense<0.000000e+00> : vector<128x128xf32>
    %6 = tpu.matmul %4, %5, %cst {dimension_numbers = #tpu.dot_dimension_numbers<[1], [0], [0], [1], [0, 0, 1, 1], [], []>} : vector<128x128xbf16>, vector<128x128xbf16>, vector<128x128xf32> -> vector<128x128xf32>
    %7 = arith.addf %3, %6 : vector<128x128xf32>
    %c0_6 = arith.constant 0 : index
    %c0_7 = arith.constant 0 : index
    %8 = vector.load %arg6[%c0_6, %c0_7] : memref<128x128xf32, #tpu.memory_space<vmem>>, vector<128x128xf32>
    tpu.vector_store %arg6[%c0_6, %c0_7], %7 {strides = array<i32>} : memref<128x128xf32, #tpu.memory_space<vmem>>, vector<128x128xf32>,
    %c1_i32 = arith.constant 1 : i32
    %9 = arith.cmpi eq, %arg1, %c1_i32 : i32
    %10 = arith.extui %9 : i1 to i32
    %c0_i32_8 = arith.constant 0 : i32
    %11 = arith.cmpi ne, %10, %c0_i32_8 : i32
    scf.if %11 {
      %c0_9 = arith.constant 0 : index
      %c0_10 = arith.constant 0 : index
      %12 = vector.load %arg6[%c0_9, %c0_10] : memref<128x128xf32, #tpu.memory_space<vmem>>, vector<128x128xf32>
      %c0_11 = arith.constant 0 : index
      %c0_12 = arith.constant 0 : index
      %13 = vector.load %arg4[%c0_11, %c0_12] : memref<128x128xf32, #tpu.memory_space<vmem>>, vector<128x128xf32>
      %cst_13 = arith.constant dense<0.000000e+00> : vector<128x128xf32>
      %14 = tpu.matmul %12, %13, %cst_13 {dimension_numbers = #tpu.dot_dimension_numbers<[1], [0], [0], [1], [0, 0, 1, 1], [], []>} : vector<128x128xf32>, vector<128x128xf32>, vector<128x128xf32> -> vector<128x128xf32>
      %c0_14 = arith.constant 0 : index
      %c0_15 = arith.constant 0 : index
      %15 = vector.load %arg5[%c0_14, %c0_15] : memref<128x128xf32, #tpu.memory_space<vmem>>, vector<128x128xf32>
      tpu.vector_store %arg5[%c0_14, %c0_15], %14 {strides = array<i32>} : memref<128x128xf32, #tpu.memory_space<vmem>>, vector<128x128xf32>,
    } else {
    }
    return
  }
  func.func @transform_0(%arg0: i32, %arg1: i32) -> (i32, i32) {
    %c0_i32 = arith.constant 0 : i32
    return %arg0, %arg1 : i32, i32
  }
  func.func @transform_1(%arg0: i32, %arg1: i32) -> (i32, i32) {
    %c0_i32 = arith.constant 0 : i32
    %c0_i32_0 = arith.constant 0 : i32
    return %arg1, %c0_i32 : i32, i32
  }
  func.func @transform_2(%arg0: i32, %arg1: i32) -> (i32, i32) {
    %c0_i32 = arith.constant 0 : i32
    %c0_i32_0 = arith.constant 0 : i32
    %c0_i32_1 = arith.constant 0 : i32
    return %c0_i32, %c0_i32_0 : i32, i32
  }
  func.func @transform_3(%arg0: i32, %arg1: i32) -> (i32, i32) {
    %c0_i32 = arith.constant 0 : i32
    %c0_i32_0 = arith.constant 0 : i32
    return %arg0, %c0_i32 : i32, i32
  }
}

</mosaic_0001>

<bundles_post_ra>
// kernel: tpu_custom_call.1
= control target key start
LH: loop header
LB: loop body
LE: loop exit
PB: predicated region body
PF: predicated region fallthrough
CT: control target
= control target key end

     0   :  { %s1670_s0 = inlined_call_operand.hbm [shape: bf16[256,256], index: 0, kind: input, shape index: {}]   ;;  %s1671_s1 = inlined_call_operand.hbm [shape: bf16[256,128], index: 1, kind: input, shape index: {}]   ;;  %s1672_s2 = inlined_call_operand.hbm [shape: f32[128,128], index: 2, kind: input, shape index: {}]   ;;  %s1673_s3 = inlined_call_operand.hbm [shape: f32[256,128], index: 3, kind: output, shape index: {}]  }
   0x1   :  { %1685 = sst [smem:[#allocation25_spill]] %s1670_s0 }
   0x2   :  { %1686 = sst [smem:[#allocation26_spill]] %s1672_s2 }
   0x3   :  { %1687 = sst [smem:[#allocation27_spill]] %s1673_s3 }
   0x4   :  { %8 = vsyncpa [#allocation4], 0 }
   0x5   :  { %10 = vsyncpa [#allocation4 + $0x1], 0 }
   0x6   :  { %11 = vsyncpa [#allocation7], 0 }
   0x7   :  { %13 = vsyncpa [#allocation7 + $0x1], 0 }
   0x8   :  { %14 = vsyncpa [#allocation5], 0 }
   0x9   :  { %16 = vsyncpa [#allocation5 + $0x1], 0  ;;  %s1366_s12 = smov 0   ;;  %s1368_s13 = smov 0  }
   0xa   :  { %s1370_s14 = smov 0   ;;  %s1372_s15 = smov 0  }
   0xb   :  { %s1374_s16 = smov 0   ;;  %s1376_s17 = smov 0  }
   0xc   :  { %s1378_s18 = smov 0   ;;  %s1380_s19 = smov 0  }
   0xd   :  { %s1382_s20 = smov 0   ;;  %s1384_s21 = smov 0  }
   0xe   :  { %s1386_s22 = smov 0   ;;  %s1388_s23 = smov 0  }
   0xf   :  { %s1390_s24 = smov 0   ;;  %s1392_s25 = smov 0  }
  0x10 LB: > { %1688 = sst [smem:[#allocation14_spill]] %s1284_s12  ;;  %s1433_s26 = sadd.s32 4294967295, %s1336_s25   ;;  %s1336_s25 = sphi %s1392_s25, %s22_s25   ;;  %s1332_s24 = sphi %s1390_s24, %s1732_s24   ;;  %s1328_s23 = sphi %s1388_s23, %s1731_s23   ;;  %s1324_s22 = sphi %s1386_s22, %s1730_s22   ;;  %s1320_s21 = sphi %s1384_s21, %s1729_s21   ;;  %s1316_s20 = sphi %s1382_s20, %s1717_s20   ;;  %s1312_s19 = sphi %s1380_s19, %s1728_s19   ;;  %s1308_s18 = sphi %s1378_s18, %s1727_s18   ;;  %s1304_s17 = sphi %s1376_s17, %s1726_s17   ;;  %s1300_s16 = sphi %s1374_s16, %s1725_s16   ;;  %s1296_s15 = sphi %s1372_s15, %s1724_s15   ;;  %s1292_s14 = sphi %s1370_s14, %s1715_s14   ;;  %s1288_s13 = sphi %s1368_s13, %s1723_s13   ;;  %s1284_s12 = sphi %s1366_s12, %s1722_s12  }
  0x11   : > { %1689 = sst [smem:[#allocation15_spill]] %s1292_s14  ;;  %s765_s27 = sadd.s32 4294967294, %s1336_s25  }
  0x12   : > { %1690 = sst [smem:[#allocation16_spill]] %s1316_s20  ;;  %p56_p0 = scmp.ne.s32.totalorder %s1312_s19, %s1308_s18 }
  0x13   : > { %1691 = sst [smem:[#allocation17_spill]] %s1324_s22  ;;  %p57_p1 = scmp.eq.s32.totalorder %s1433_s26, 0 }
  0x14   : > { %1692 = sst [smem:[#allocation18_spill]] %s1332_s24  ;;  %p82_p2 = scmp.ne.s32.totalorder %s1300_s16, %s1296_s15 }
  0x15   : > { %p126_p3 = scmp.ne.s32.totalorder %s1292_s14, %s1288_s13  ;;  %p1443_p4 = por %p57_p1, %p56_p0 }
  0x16   : > { %p127_p5 = scmp.eq.s32.totalorder %s1433_s26, 3  ;;  %p1450_p6 = por %p82_p2, %p57_p1 }
  0x17   : > { %p132_p7 = scmp.ne.s32.totalorder %s1288_s13, %s1284_s12  ;;  %p133_p9 = scmp.eq.s32.totalorder %s765_s27, 3 }
  0x18   : > { %p1456_p8 = por %p127_p5, %p126_p3  ;;  %p766_p10 = scmp.ge.s32.totalorder %s1336_s25, 1 }
  0x19   : > { %p140_p11 = scmp.lt.s32.totalorder %s1336_s25, 5  ;;  %p1462_p12 = por %p133_p9, %p132_p7 }
  0x1a   : > { %s1695_s30 = scalar_select %p1456_p8, 1, 0 }
  0x1b   : > { %s1697_s4 = scalar_select %p1462_p12, 1, 0 }
  0x1c   : > { %1696 = sst [smem:[#allocation19_spill]] %s1695_s30  ;;  %p1466_p13 = pnand %p766_p10, %p140_p11 }
  0x1d   : > { %1698 = sst [smem:[#allocation20_spill]] %s1697_s4  ;;  %s1338_s9 = smov [#allocation8]  }
  0x1e   : > { %s1700_s2 = sld [smem:[#allocation26_spill]]  ;;  %p953_p0 = pneg %p1466_p13 }
  0x1f   : > { %s153_s10 = sshll.u32 %s1338_s9, 4  ;;  %s1674_s11 = smov 128   ;;  %s154_s10 = int_to_ptr.vmem [resolvable:$true] %s153_s10 }
  0x20   : > { %p954_p2 = pnand %p953_p0, %p57_p1  ;;  %s1340_s15 = smov 8  }
  0x21   : > { %s31_s18 = sadd.s32 1, %s1328_s23  ;;  %s34_s27 = sadd.s32 1, %s1332_s24 }
  0x22   : > { %p32_p3 = scmp.ge.s32.totalorder %s31_s18, 2  ;;  %s43_s6 = sadd.s32 1, %s1316_s20 }
  0x23   : > { %p50_p5 = scmp.ne.s32.totalorder %s1316_s20, %s1312_s19  ;;  %p51_p7 = scmp.eq.s32.totalorder %s1336_s25, 0 }
  0x24   : > { %s151_s8 = sshll.u32 %s1700_s2, 4  ;;  %s1734_s18 = smov (%p32_p3, %s31_s18), 0  ;;  %s152_s8 = int_to_ptr.hbm [resolvable:$true] %s151_s8 }
  0x25   : > { %956 = dma.hbm_to_vmem [thread:$0]  (!%p954_p2), %s152_s8, 2048, %s154_s10, [#allocation7], %s1674_s11, %s1674_s11, %s1340_s15  }
  0x26   : > { %1701 = sst [smem:[#allocation21_spill]] %s1734_s18  ;;  %s1736_s27 = smov (!%p32_p3, %s34_s27), %s1332_s24 }
  0x27   : > { %s1490_s7 = ssub.s32 %s1328_s23, %s1734_s18  ;;  %p1494_p9 = por %p51_p7, %p50_p5 }
  0x28   : > { %p36_p10 = scmp.ge.s32.totalorder %s1736_s27, 2  ;;  %p67_p11 = scmp.eq.s32.totalorder %s1490_s7, 0 }
  0x29   : > { %s116_s9 = sadd.s32 1, %s1292_s14  ;;  %p969_p0 = scmp.lt.s32.totalorder %s1336_s25, 4 }
  0x2a   : > { %s1738_s27 = smov (%p36_p10, %s1736_s27), 0  ;;  %s167_s10 = sand.u32 1, %s1316_s20  }
  0x2b   : > { %1703 = sst [smem:[#allocation22_spill]] %s1738_s27  ;;  %s852_s15 = sshll.u32 %s1332_s24, 5 }
  0x2c   : > { %s38_s11 = ssub.s32 %s1332_s24, %s1738_s27  ;;  %s769_s18 = sshll.u32 %s167_s10, 6 }
  0x2d   : > { %s40_s2 = sor.u32 %s1490_s7, %s38_s11  ;;  %p114_p2 = scmp.eq.s32.totalorder %s38_s11, 0 }
  0x2e   : > { %p41_p3 = scmp.eq.s32.totalorder %s40_s2, 0  ;;  %s176_s3 = sadd.s32 %s1328_s23, %s852_s15 }
  0x2f   : > { %s1509_s4 = scalar_select %p114_p2, %s1292_s14, %s116_s9  }
  0x30   : > { %s1512_s12 = scalar_select %p41_p3, %s1316_s20, %s43_s6  }
  0x31   : > { %1704 = sst [smem:[#allocation23_spill]] %s1509_s4  ;;  %s772_s30 = sshll.u32 %s176_s3, 2 }
  0x32   : > { %1705 = sst [smem:[#allocation24_spill]] %s1512_s12  ;;  %s171_s22 = scalar_lea.vmem [#allocation3], %s769_s18 }
  0x33   : > { %s181_s27 = sshll.u32 %s171_s22, 4  ;;  %s1706_s0 = sld [smem:[#allocation25_spill]]  ;;  %s182_s27 = int_to_ptr.vmem [resolvable:$true] %s181_s27 }
  0x34   : > { %p958_p5 = pnand %p969_p0, %p1494_p9  ;;  %s168_s6 = scalar_lea.sflag [#allocation4], %s167_s10 }
  0x35   : > { %s1341_s15 = smov 64   ;;  %s1342_s12 = smov 4  }
  0x36   : > { %s1707_s20 = smov 128   ;;  %s191_s3 = sand.u32 1, %s1336_s25  }
  0x37   : > { %s69_s18 = sadd.s32 1, %s1304_s17  ;;  %p76_p10 = scmp.ne.s32.totalorder %s1304_s17, %s1300_s16 }
  0x38   : > { %s1530_s22 = scalar_select %p67_p11, %s1304_s17, %s69_s18  }
  0x39   : > { %s178_s2 = scalar_lea.hbm %s1706_s0, %s772_s30  ;;  %p78_p2 = por %p76_p10, %p51_p7 }
  0x3a   : > { %s179_s9 = sshll.u32 %s178_s2, 4  ;;  %s193_s24 = sand.u32 1, %s1304_s17   ;;  %s180_s9 = int_to_ptr.hbm [resolvable:$true] %s179_s9 }
  0x3b   : > { %960 = dma.hbm_to_vmem [thread:$0]  (!%p958_p5), %s180_s9, 1024, %s182_s27, %s168_s6, %s1707_s20, %s1341_s15, %s1342_s12  }
  0x3c   : > { %s773_s30 = sshll.u32 %s193_s24, 6  ;;  %s853_s8 = sshll.u32 %s1328_s23, 6 }
  0x3d   : > { %s200_s10 = scalar_lea.hbm %s1671_s1, %s853_s8  ;;  %s195_s4 = scalar_lea.vmem [#allocation6], %s773_s30 }
  0x3e   : > { %s201_s0 = sshll.u32 %s200_s10, 4  ;;  %s203_s14 = sshll.u32 %s195_s4, 4  ;;  %s202_s0 = int_to_ptr.hbm [resolvable:$true] %s201_s0  ;;  %s204_s14 = int_to_ptr.vmem [resolvable:$true] %s203_s14 }
  0x3f   : > { %p961_p9 = pnand %p969_p0, %p78_p2  ;;  %s192_s20 = scalar_lea.sflag [#allocation7], %s191_s3 }
  0x40   : > { %215 = sbr.rel (%p1466_p13) target bundleno = 505 (0x1f9), region = 32  ;;  %s217_s27 = sand.u32 (!%p1466_p13), 1, %s1312_s19  }
  0x41   : > { %963 = dma.hbm_to_vmem [thread:$0]  (!%p961_p9), %s202_s0, 1024, %s204_s14, %s192_s20, %s1341_s15, %s1341_s15, %s1342_s12  }
  0x42   : > { %s777_s7 = sshll.u32 (!%p1466_p13), %s217_s27, 6  ;;  %s218_s9 = scalar_lea.sflag (!%p1466_p13), [#allocation4], %s217_s27 }
  0x43   : > { %s1544_s6 = scalar_lea.vmem (!%p1466_p13), [#allocation3], %s777_s7 }
  0x45   : > { %1267 = dma.done.wait (%p1443_p4), %s218_s9, 1024  }
  0x46   : > { %1269 = vsyncadd (%p1443_p4), %s218_s9, 4294966272  ;;  %s227_s4 = sand.u32 1, %s1433_s26   ;;  %s229_s0 = sand.u32 1, %s1300_s16  }
  0x47   : > { %s778_s12 = sshll.u32 %s229_s0, 6  ;;  %s228_s14 = scalar_lea.sflag [#allocation7], %s227_s4 }
  0x48   : > { %s1552_s5 = scalar_lea.vmem [#allocation6], %s778_s12 }
  0x49   : > { %1271 = dma.done.wait (%p1450_p6), %s228_s14, 1024  }
  0x4a   : > { %1273 = vsyncadd (%p1450_p6), %s228_s14, 4294966272 }
  0x4b   : > { %1275 = dma.done.wait (%p57_p1), [#allocation7], 2048  }
  0x4c   : > { %1277 = vsyncadd (%p57_p1), [#allocation7], 4294965248  ;;  %s262_s28 = sand.u32 1, %s1288_s13   ;;  %p781_p4 = scmp.ne.s32.totalorder %s1320_s21, 0 }
  0x4d   : > { %s780_s15 = sshll.u32 %s262_s28, 7 }
  0x4e   : > { %s1565_s3 = scalar_lea.vmem [#allocation9], %s780_s15  ;;  %271 = sbr.rel (%p781_p4) target bundleno = 100 (0x64), region = 48 }
  0x53   : > { %v1343_v0 = vmov 0.0  }
  0x54   : > { %272 = vst [vmem:[#allocation2 + $0x30] sm:$0xff] %v1343_v0 }
  0x55   : > { %273 = vst [vmem:[#allocation2] sm:$0xff] %v1343_v0 }
  0x56   : > { %274 = vst [vmem:[#allocation2 + $0x58] sm:$0xff] %v1343_v0 }
  0x57   : > { %275 = vst [vmem:[#allocation2 + $0x18] sm:$0xff] %v1343_v0 }
  0x58   : > { %276 = vst [vmem:[#allocation2 + $0x50] sm:$0xff] %v1343_v0 }
  0x59   : > { %277 = vst [vmem:[#allocation2 + $0x68] sm:$0xff] %v1343_v0 }
  0x5a   : > { %278 = vst [vmem:[#allocation2 + $0x8] sm:$0xff] %v1343_v0 }
  0x5b   : > { %279 = vst [vmem:[#allocation2 + $0x48] sm:$0xff] %v1343_v0 }
  0x5c   : > { %280 = vst [vmem:[#allocation2 + $0x40] sm:$0xff] %v1343_v0 }
  0x5d   : > { %281 = vst [vmem:[#allocation2 + $0x20] sm:$0xff] %v1343_v0 }
  0x5e   : > { %282 = vst [vmem:[#allocation2 + $0x10] sm:$0xff] %v1343_v0 }
  0x5f   : > { %283 = vst [vmem:[#allocation2 + $0x38] sm:$0xff] %v1343_v0 }
  0x60   : > { %284 = vst [vmem:[#allocation2 + $0x60] sm:$0xff] %v1343_v0 }
  0x61   : > { %285 = vst [vmem:[#allocation2 + $0x70] sm:$0xff] %v1343_v0 }
  0x62   : > { %286 = vst [vmem:[#allocation2 + $0x78] sm:$0xff] %v1343_v0 }
  0x63   : > { %287 = vst [vmem:[#allocation2 + $0x28] sm:$0xff] %v1343_v0 }
  0x64 PF: > { %v869_v1 = vld [vmem:[%s1552_s5 + $0x38] sm:$0xff]  ;;  %v868_v2 = vld [vmem:[%s1552_s5 + $0x30] sm:$0xff]  ;;  %v867_v3 = vld [vmem:[%s1552_s5 + $0x28] sm:$0xff]  ;;  %p846_p1 = scmp.ne.s32.totalorder %s1320_s21, 1 }
  0x65   : > { %432 = vmatpush.bf16.msra.mxu0 %v869_v1  ;;  %871 = vmatpush.bf16.msra.mxu1 %v869_v1  ;;  %v866_v4 = vld [vmem:[%s1552_s5 + $0x20] sm:$0xff]  ;;  %v865_v5 = vld [vmem:[%s1552_s5 + $0x18] sm:$0xff]  ;;  %v864_v6 = vld [vmem:[%s1552_s5 + $0x10] sm:$0xff] }
  0x66   : > { %872 = vmatpush.bf16.msra.mxu2 %v869_v1  ;;  %873 = vmatpush.bf16.msra.mxu3 %v869_v1  ;;  %v863_v7 = vld [vmem:[%s1552_s5 + $0x8] sm:$0xff]  ;;  %v862_v8 = vld [vmem:[%s1552_s5] sm:$0xff]  ;;  %v856_v10 = vld [vmem:[%s1544_s6 + $0x10] sm:$0xff] }
  0x67   : > { %v854_v9 = vld [vmem:[%s1544_s6] sm:$0xff]  ;;  %v860_v12 = vld [vmem:[%s1544_s6 + $0x30] sm:$0xff]  ;;  %v855_v13 = vld [vmem:[%s1544_s6 + $0x8] sm:$0xff] }
  0x68   : > { %v858_v11 = vld [vmem:[%s1544_s6 + $0x20] sm:$0xff]  ;;  %v857_v14 = vld [vmem:[%s1544_s6 + $0x18] sm:$0xff]  ;;  %v859_v15 = vld [vmem:[%s1544_s6 + $0x28] sm:$0xff] }
  0x69   : > { %433 = vmatpush.bf16.msra.mxu0 %v868_v2  ;;  %874 = vmatpush.bf16.msra.mxu1 %v868_v2  ;;  %v861_v16 = vld [vmem:[%s1544_s6 + $0x38] sm:$0xff]  ;;  %v288_v17 = vld [vmem:[#allocation2 + $0x30] sm:$0xff]  ;;  %v296_v23 = vld [vmem:[#allocation2 + $0x40] sm:$0xff] }
  0x6a   : > { %875 = vmatpush.bf16.msra.mxu2 %v868_v2  ;;  %876 = vmatpush.bf16.msra.mxu3 %v868_v2  ;;  %v292_v18 = vld [vmem:[#allocation2 + $0x50] sm:$0xff]  ;;  %v300_v24 = vld [vmem:[#allocation2 + $0x60] sm:$0xff]  ;;  %v293_v26 = vld [vmem:[#allocation2 + $0x68] sm:$0xff] }
  0x6b   : > { %v289_v25 = vld [vmem:[#allocation2] sm:$0xff]  ;;  %v301_v36 = vld [vmem:[#allocation2 + $0x70] sm:$0xff]  ;;  %v290_v37 = vld [vmem:[#allocation2 + $0x58] sm:$0xff] }
  0x6c   : > { %v297_v35 = vld [vmem:[#allocation2 + $0x20] sm:$0xff]  ;;  %v294_v38 = vld [vmem:[#allocation2 + $0x8] sm:$0xff]  ;;  %v298_v47 = vld [vmem:[#allocation2 + $0x10] sm:$0xff] }
  0x6d   : > { %434 = vmatpush.bf16.msra.mxu0 %v867_v3  ;;  %877 = vmatpush.bf16.msra.mxu1 %v867_v3  ;;  %v302_v48 = vld [vmem:[#allocation2 + $0x78] sm:$0xff]  ;;  %v295_v50 = vld [vmem:[#allocation2 + $0x48] sm:$0xff] }
  0x6e   : > { %878 = vmatpush.bf16.msra.mxu2 %v867_v3  ;;  %879 = vmatpush.bf16.msra.mxu3 %v867_v3  ;;  %v291_v49 = vld [vmem:[#allocation2 + $0x18] sm:$0xff]  ;;  %v303_v60 = vld [vmem:[#allocation2 + $0x28] sm:$0xff] }
  0x6f   : > { %v299_v59 = vld [vmem:[#allocation2 + $0x38] sm:$0xff] }
  0x71   : > { %435 = vmatpush.bf16.msra.mxu0 %v866_v4  ;;  %880 = vmatpush.bf16.msra.mxu1 %v866_v4 }
  0x72   : > { %881 = vmatpush.bf16.msra.mxu2 %v866_v4  ;;  %882 = vmatpush.bf16.msra.mxu3 %v866_v4 }
  0x75   : > { %436 = vmatpush.bf16.msra.mxu0 %v865_v5  ;;  %883 = vmatpush.bf16.msra.mxu1 %v865_v5 }
  0x76   : > { %884 = vmatpush.bf16.msra.mxu2 %v865_v5  ;;  %885 = vmatpush.bf16.msra.mxu3 %v865_v5 }
  0x79   : > { %437 = vmatpush.bf16.msra.mxu0 %v864_v6  ;;  %886 = vmatpush.bf16.msra.mxu1 %v864_v6 }
  0x7a   : > { %887 = vmatpush.bf16.msra.mxu2 %v864_v6  ;;  %888 = vmatpush.bf16.msra.mxu3 %v864_v6 }
  0x7d   : > { %438 = vmatpush.bf16.msra.mxu0 %v863_v7  ;;  %889 = vmatpush.bf16.msra.mxu1 %v863_v7 }
  0x7e   : > { %890 = vmatpush.bf16.msra.mxu2 %v863_v7  ;;  %891 = vmatpush.bf16.msra.mxu3 %v863_v7 }
  0x81   : > { %439 = vmatpush.bf16.msra.mxu0 %v862_v8  ;;  %892 = vmatpush.bf16.msra.mxu1 %v862_v8 }
  0x82   : > { %893 = vmatpush.bf16.msra.mxu2 %v862_v8  ;;  %894 = vmatpush.bf16.msra.mxu3 %v862_v8 }
  0x84   : > { %440 = vmatmul.bf16.vlgmr.msra.gmra.mxu0 %v854_v9  ;;  %450 = vmatmul.bf16.vlgmr.msra.gmra.mxu1 %v856_v10 }
  0x85   : > { %460 = vmatmul.bf16.vlgmr.msra.gmra.mxu2 %v858_v11  ;;  %470 = vmatmul.bf16.vlgmr.msra.gmra.mxu3 %v860_v12 }
  0x94   : > { %445 = vmatmul.bf16.gmra.mxu0 %v855_v13  ;;  %455 = vmatmul.bf16.gmra.mxu1 %v857_v14 }
  0x95   : > { %465 = vmatmul.bf16.gmra.mxu2 %v859_v15  ;;  %475 = vmatmul.bf16.gmra.mxu3 %v861_v16 }
 0x101   : > { %v441_v19 = vpop.f32.mrf.mxu0  ;;  %v451_v20 = vpop.f32.mrf.mxu1 }
 0x102   : > { %v481_v21 = vadd.f32 %v441_v19, %v288_v17  ;;  %v485_v22 = vadd.f32 %v451_v20, %v292_v18 }
 0x104   : > { %497 = vst [vmem:[#allocation2 + $0x30] sm:$0xff] %v481_v21 }
 0x105   : > { %501 = vst [vmem:[#allocation2 + $0x50] sm:$0xff] %v485_v22 }
 0x108   : > { %v461_v27 = vpop.f32.mrf.mxu2  ;;  %v471_v28 = vpop.f32.mrf.mxu3 }
 0x109   : > { %v489_v29 = vadd.f32 %v461_v27, %v296_v23  ;;  %v493_v30 = vadd.f32 %v471_v28, %v300_v24  ;;  %v443_v31 = vpop.f32.mrf.mxu0  ;;  %v453_v32 = vpop.f32.mrf.mxu1 }
 0x10a   : > { %v482_v33 = vadd.f32 %v443_v31, %v289_v25  ;;  %v486_v34 = vadd.f32 %v453_v32, %v293_v26 }
 0x10b   : > { %505 = vst [vmem:[#allocation2 + $0x40] sm:$0xff] %v489_v29 }
 0x10c   : > { %509 = vst [vmem:[#allocation2 + $0x60] sm:$0xff] %v493_v30 }
 0x10d   : > { %498 = vst [vmem:[#allocation2] sm:$0xff] %v482_v33 }
 0x10e   : > { %502 = vst [vmem:[#allocation2 + $0x68] sm:$0xff] %v486_v34 }
 0x110   : > { %v463_v39 = vpop.f32.mrf.mxu2  ;;  %v473_v40 = vpop.f32.mrf.mxu3 }
 0x111   : > { %v490_v41 = vadd.f32 %v463_v39, %v297_v35  ;;  %v494_v42 = vadd.f32 %v473_v40, %v301_v36  ;;  %v446_v43 = vpop.f32.mrf.mxu0  ;;  %v456_v44 = vpop.f32.mrf.mxu1 }
 0x112   : > { %v483_v45 = vadd.f32 %v446_v43, %v290_v37  ;;  %v487_v46 = vadd.f32 %v456_v44, %v294_v38 }
 0x113   : > { %506 = vst [vmem:[#allocation2 + $0x20] sm:$0xff] %v490_v41 }
 0x114   : > { %510 = vst [vmem:[#allocation2 + $0x70] sm:$0xff] %v494_v42 }
 0x115   : > { %499 = vst [vmem:[#allocation2 + $0x58] sm:$0xff] %v483_v45 }
 0x116   : > { %503 = vst [vmem:[#allocation2 + $0x8] sm:$0xff] %v487_v46 }
 0x118   : > { %v466_v51 = vpop.f32.mrf.mxu2  ;;  %v476_v52 = vpop.f32.mrf.mxu3 }
 0x119   : > { %v491_v53 = vadd.f32 %v466_v51, %v298_v47  ;;  %v495_v54 = vadd.f32 %v476_v52, %v302_v48  ;;  %v448_v55 = vpop.f32.mrf.mxu0  ;;  %v458_v56 = vpop.f32.mrf.mxu1 }
 0x11a   : > { %v484_v57 = vadd.f32 %v448_v55, %v291_v49  ;;  %v488_v58 = vadd.f32 %v458_v56, %v295_v50 }
 0x11b   : > { %507 = vst [vmem:[#allocation2 + $0x10] sm:$0xff] %v491_v53 }
 0x11c   : > { %511 = vst [vmem:[#allocation2 + $0x78] sm:$0xff] %v495_v54 }
 0x11d   : > { %500 = vst [vmem:[#allocation2 + $0x18] sm:$0xff] %v484_v57 }
 0x11e   : > { %504 = vst [vmem:[#allocation2 + $0x48] sm:$0xff] %v488_v58 }
 0x120   : > { %v468_v61 = vpop.f32.mrf.mxu2  ;;  %v478_v62 = vpop.f32.mrf.mxu3  ;;  %516 = sbr.rel (%p846_p1) target bundleno = 483 (0x1e3), region = 52 }
 0x121   : > { %v492_v63 = vadd.f32 %v468_v61, %v299_v59  ;;  %v496_v0 = vadd.f32 %v478_v62, %v303_v60 }
 0x123   : > { %508 = vst [vmem:[#allocation2 + $0x38] sm:$0xff] %v492_v63 }
 0x124   : > { %512 = vst [vmem:[#allocation2 + $0x28] sm:$0xff] %v496_v0 }
 0x125   : > { %v548_v1 = vld [vmem:[#allocation8 + $0x78] sm:$0xff]  ;;  %v547_v2 = vld [vmem:[#allocation8 + $0x70] sm:$0xff]  ;;  %v546_v3 = vld [vmem:[#allocation8 + $0x68] sm:$0xff] }
 0x126   : > { %896 = vmatpush.msra.mxu2 %v548_v1  ;;  %897 = vmatpush.msra.mxu3 %v548_v1  ;;  %v545_v4 = vld [vmem:[#allocation8 + $0x60] sm:$0xff]  ;;  %v544_v5 = vld [vmem:[#allocation8 + $0x58] sm:$0xff]  ;;  %v543_v6 = vld [vmem:[#allocation8 + $0x50] sm:$0xff] }
 0x127   : > { %549 = vmatpush.msra.mxu0 %v548_v1  ;;  %895 = vmatpush.msra.mxu1 %v548_v1  ;;  %v542_v7 = vld [vmem:[#allocation8 + $0x48] sm:$0xff]  ;;  %v541_v8 = vld [vmem:[#allocation8 + $0x40] sm:$0xff]  ;;  %v540_v9 = vld [vmem:[#allocation8 + $0x38] sm:$0xff] }
 0x128   : > { %899 = vmatpush.msra.mxu2 %v547_v2  ;;  %900 = vmatpush.msra.mxu3 %v547_v2  ;;  %v539_v10 = vld [vmem:[#allocation8 + $0x30] sm:$0xff]  ;;  %v538_v11 = vld [vmem:[#allocation8 + $0x28] sm:$0xff]  ;;  %v537_v12 = vld [vmem:[#allocation8 + $0x20] sm:$0xff] }
 0x129   : > { %550 = vmatpush.msra.mxu0 %v547_v2  ;;  %898 = vmatpush.msra.mxu1 %v547_v2  ;;  %v536_v13 = vld [vmem:[#allocation8 + $0x18] sm:$0xff]  ;;  %v535_v14 = vld [vmem:[#allocation8 + $0x10] sm:$0xff]  ;;  %v534_v15 = vld [vmem:[#allocation8 + $0x8] sm:$0xff] }
 0x12a   : > { %902 = vmatpush.msra.mxu2 %v546_v3  ;;  %903 = vmatpush.msra.mxu3 %v546_v3  ;;  %v533_v16 = vld [vmem:[#allocation8] sm:$0xff]  ;;  %v517_v19 = vld [vmem:[#allocation2 + $0x30] sm:$0xff]  ;;  %v522_v24 = vld [vmem:[#allocation2 + $0x68] sm:$0xff] }
 0x12b   : > { %551 = vmatpush.msra.mxu0 %v546_v3  ;;  %901 = vmatpush.msra.mxu1 %v546_v3  ;;  %v525_v17 = vld [vmem:[#allocation2 + $0x40] sm:$0xff]  ;;  %v521_v20 = vld [vmem:[#allocation2 + $0x50] sm:$0xff]  ;;  %v531_v26 = vld [vmem:[#allocation2 + $0x78] sm:$0xff] }
 0x12c   : > { %905 = vmatpush.msra.mxu2 %v545_v4  ;;  %906 = vmatpush.msra.mxu3 %v545_v4  ;;  %v529_v18 = vld [vmem:[#allocation2 + $0x60] sm:$0xff]  ;;  %v530_v22 = vld [vmem:[#allocation2 + $0x70] sm:$0xff]  ;;  %v519_v27 = vld [vmem:[#allocation2 + $0x58] sm:$0xff] }
 0x12d   : > { %552 = vmatpush.msra.mxu0 %v545_v4  ;;  %904 = vmatpush.msra.mxu1 %v545_v4  ;;  %v526_v21 = vld [vmem:[#allocation2 + $0x20] sm:$0xff]  ;;  %v527_v25 = vld [vmem:[#allocation2 + $0x10] sm:$0xff]  ;;  %v523_v28 = vld [vmem:[#allocation2 + $0x8] sm:$0xff] }
 0x12e   : > { %908 = vmatpush.msra.mxu2 %v544_v5  ;;  %909 = vmatpush.msra.mxu3 %v544_v5  ;;  %v518_v23 = vld [vmem:[#allocation2] sm:$0xff]  ;;  %v528_v29 = vld [vmem:[#allocation2 + $0x38] sm:$0xff]  ;;  %v532_v30 = vld [vmem:[#allocation2 + $0x28] sm:$0xff] }
 0x12f   : > { %553 = vmatpush.msra.mxu0 %v544_v5  ;;  %907 = vmatpush.msra.mxu1 %v544_v5  ;;  %v520_v31 = vld [vmem:[#allocation2 + $0x18] sm:$0xff]  ;;  %v524_v32 = vld [vmem:[#allocation2 + $0x48] sm:$0xff] }
 0x130   : > { %911 = vmatpush.msra.mxu2 %v543_v6  ;;  %912 = vmatpush.msra.mxu3 %v543_v6 }
 0x131   : > { %554 = vmatpush.msra.mxu0 %v543_v6  ;;  %910 = vmatpush.msra.mxu1 %v543_v6 }
 0x132   : > { %914 = vmatpush.msra.mxu2 %v542_v7  ;;  %915 = vmatpush.msra.mxu3 %v542_v7 }
 0x133   : > { %555 = vmatpush.msra.mxu0 %v542_v7  ;;  %913 = vmatpush.msra.mxu1 %v542_v7 }
 0x134   : > { %917 = vmatpush.msra.mxu2 %v541_v8  ;;  %918 = vmatpush.msra.mxu3 %v541_v8 }
 0x135   : > { %556 = vmatpush.msra.mxu0 %v541_v8  ;;  %916 = vmatpush.msra.mxu1 %v541_v8 }
 0x136   : > { %920 = vmatpush.msra.mxu2 %v540_v9  ;;  %921 = vmatpush.msra.mxu3 %v540_v9 }
 0x137   : > { %557 = vmatpush.msra.mxu0 %v540_v9  ;;  %919 = vmatpush.msra.mxu1 %v540_v9 }
 0x138   : > { %923 = vmatpush.msra.mxu2 %v539_v10  ;;  %924 = vmatpush.msra.mxu3 %v539_v10 }
 0x139   : > { %558 = vmatpush.msra.mxu0 %v539_v10  ;;  %922 = vmatpush.msra.mxu1 %v539_v10 }
 0x13a   : > { %926 = vmatpush.msra.mxu2 %v538_v11  ;;  %927 = vmatpush.msra.mxu3 %v538_v11 }
 0x13b   : > { %559 = vmatpush.msra.mxu0 %v538_v11  ;;  %925 = vmatpush.msra.mxu1 %v538_v11 }
 0x13c   : > { %929 = vmatpush.msra.mxu2 %v537_v12  ;;  %930 = vmatpush.msra.mxu3 %v537_v12 }
 0x13d   : > { %560 = vmatpush.msra.mxu0 %v537_v12  ;;  %928 = vmatpush.msra.mxu1 %v537_v12 }
 0x13e   : > { %932 = vmatpush.msra.mxu2 %v536_v13  ;;  %933 = vmatpush.msra.mxu3 %v536_v13 }
 0x13f   : > { %561 = vmatpush.msra.mxu0 %v536_v13  ;;  %931 = vmatpush.msra.mxu1 %v536_v13 }
 0x140   : > { %935 = vmatpush.msra.mxu2 %v535_v14  ;;  %936 = vmatpush.msra.mxu3 %v535_v14 }
 0x141   : > { %562 = vmatpush.msra.mxu0 %v535_v14  ;;  %934 = vmatpush.msra.mxu1 %v535_v14 }
 0x142   : > { %938 = vmatpush.msra.mxu2 %v534_v15  ;;  %939 = vmatpush.msra.mxu3 %v534_v15 }
 0x143   : > { %563 = vmatpush.msra.mxu0 %v534_v15  ;;  %937 = vmatpush.msra.mxu1 %v534_v15 }
 0x144   : > { %941 = vmatpush.msra.mxu2 %v533_v16  ;;  %942 = vmatpush.msra.mxu3 %v533_v16 }
 0x145   : > { %589 = vmatmul.f32.vlgmr.msra.gmra.mxu2 %v525_v17  ;;  %601 = vmatmul.f32.vlgmr.msra.gmra.mxu3 %v529_v18 }
 0x146   : > { %564 = vmatpush.msra.mxu0 %v533_v16  ;;  %940 = vmatpush.msra.mxu1 %v533_v16 }
 0x147   : > { %565 = vmatmul.f32.vlgmr.msra.gmra.mxu0 %v517_v19  ;;  %577 = vmatmul.f32.vlgmr.msra.gmra.mxu1 %v521_v20 }
 0x14d   : > { %592 = vmatmul.f32.gmra.mxu2 %v526_v21  ;;  %604 = vmatmul.f32.gmra.mxu3 %v530_v22 }
 0x14f   : > { %568 = vmatmul.f32.gmra.mxu0 %v518_v23  ;;  %580 = vmatmul.f32.gmra.mxu1 %v522_v24 }
 0x155   : > { %595 = vmatmul.f32.gmra.mxu2 %v527_v25  ;;  %607 = vmatmul.f32.gmra.mxu3 %v531_v26 }
 0x157   : > { %571 = vmatmul.f32.gmra.mxu0 %v519_v27  ;;  %583 = vmatmul.f32.gmra.mxu1 %v523_v28 }
 0x15d   : > { %598 = vmatmul.f32.gmra.mxu2 %v528_v29  ;;  %610 = vmatmul.f32.gmra.mxu3 %v532_v30 }
 0x15f   : > { %574 = vmatmul.f32.gmra.mxu0 %v520_v31  ;;  %586 = vmatmul.f32.gmra.mxu1 %v524_v32 }
 0x1c4   : > { %v566_v33 = vpop.f32.mrf.mxu0  ;;  %v578_v34 = vpop.f32.mrf.mxu1 }
 0x1c5   : > { %614 = vst [vmem:[%s1565_s3] sm:$0xff] %v566_v33 }
 0x1c6   : > { %618 = vst [vmem:[%s1565_s3 + $0x20] sm:$0xff] %v578_v34 }
 0x1c8   : > { %v590_v35 = vpop.f32.mrf.mxu2  ;;  %v602_v36 = vpop.f32.mrf.mxu3 }
 0x1c9   : > { %622 = vst [vmem:[%s1565_s3 + $0x40] sm:$0xff] %v590_v35 }
 0x1ca   : > { %626 = vst [vmem:[%s1565_s3 + $0x60] sm:$0xff] %v602_v36 }
 0x1cc   : > { %v569_v37 = vpop.f32.mrf.mxu0  ;;  %v581_v38 = vpop.f32.mrf.mxu1 }
 0x1cd   : > { %615 = vst [vmem:[%s1565_s3 + $0x8] sm:$0xff] %v569_v37 }
 0x1ce   : > { %619 = vst [vmem:[%s1565_s3 + $0x28] sm:$0xff] %v581_v38 }
 0x1d0   : > { %v593_v39 = vpop.f32.mrf.mxu2  ;;  %v605_v40 = vpop.f32.mrf.mxu3 }
 0x1d1   : > { %623 = vst [vmem:[%s1565_s3 + $0x48] sm:$0xff] %v593_v39 }
 0x1d2   : > { %627 = vst [vmem:[%s1565_s3 + $0x68] sm:$0xff] %v605_v40 }
 0x1d4   : > { %v572_v41 = vpop.f32.mrf.mxu0  ;;  %v584_v42 = vpop.f32.mrf.mxu1 }
 0x1d5   : > { %616 = vst [vmem:[%s1565_s3 + $0x10] sm:$0xff] %v572_v41 }
 0x1d6   : > { %620 = vst [vmem:[%s1565_s3 + $0x30] sm:$0xff] %v584_v42 }
 0x1d8   : > { %v596_v43 = vpop.f32.mrf.mxu2  ;;  %v608_v44 = vpop.f32.mrf.mxu3 }
 0x1d9   : > { %624 = vst [vmem:[%s1565_s3 + $0x50] sm:$0xff] %v596_v43 }
 0x1da   : > { %628 = vst [vmem:[%s1565_s3 + $0x70] sm:$0xff] %v608_v44 }
 0x1dc   : > { %v575_v45 = vpop.f32.mrf.mxu0  ;;  %v587_v46 = vpop.f32.mrf.mxu1 }
 0x1dd   : > { %617 = vst [vmem:[%s1565_s3 + $0x18] sm:$0xff] %v575_v45 }
 0x1de   : > { %621 = vst [vmem:[%s1565_s3 + $0x38] sm:$0xff] %v587_v46 }
 0x1e0   : > { %v599_v47 = vpop.f32.mrf.mxu2  ;;  %v611_v48 = vpop.f32.mrf.mxu3 }
 0x1e1   : > { %625 = vst [vmem:[%s1565_s3 + $0x58] sm:$0xff] %v599_v47 }
 0x1e2   : > { %629 = vst [vmem:[%s1565_s3 + $0x78] sm:$0xff] %v611_v48 }
 0x1e3 PF: > { %s1708_s21 = sld [smem:[#allocation17_spill]]  ;;  %s643_s11 = sshll.u32 %s1565_s3, 4  ;;  %s644_s11 = int_to_ptr.vmem [resolvable:$true] %s643_s11 }
 0x1e4   : > { %s1710_s30 = sld [smem:[#allocation27_spill]]  ;;  %s631_s10 = scalar_lea.sflag [#allocation5], %s262_s28 }
 0x1e9   : > { %s870_s29 = sshll.u32 %s1708_s21, 7 }
 0x1ea   : > { %s642_s8 = scalar_lea.hbm %s1710_s30, %s870_s29  ;;  %s1202_s6 = scalar_lea.hbm %s1710_s30, 256 }
 0x1eb   : > { %s645_s2 = sshll.u32 %s642_s8, 4  ;;  %s646_s2 = int_to_ptr.hbm [resolvable:$true] %s645_s2 }
 0x1ec   : > { %s1196_s20 = sshra.s32 %s646_s2, 4  ;;  %s1197_s20 = int_to_ptr.hbm [resolvable:$true] %s1196_s20 }
 0x1ed   : > { %s1198_s27 = scalar_lea.hbm %s1197_s20, 128  ;;  %p1203_p11 = scmp.lt.s32.totalorder %s1197_s20, %s1710_s30 }
 0x1ee   : > { %p1199_p6 = scmp.ne.s32.totalorder %s1197_s20, %s1198_s27  ;;  %p1204_p0 = scmp.lt.s32.totalorder %s1202_s6, %s1198_s27 }
 0x1f0   : > { %p1200_p13 = pnand %p1199_p6, %p1456_p8  ;;  %p1205_p3 = por %p1204_p0, %p1203_p11 }
 0x1f2   : > { %p1201_p7 = pneg %p1200_p13 }
 0x1f4   : > { %p1206_p5 = pnand %p1205_p3, %p1201_p7 }
 0x1f6   : > { %1209 = shalt.err (!%p1206_p5)
}
 0x1f7   : > { %s1344_s12 = smov 128   ;;  %s1345_s14 = smov 8  }
 0x1f8   : > { %951 = dma.vmem_to_hbm [thread:$0]  (%p1456_p8), %s644_s11, 2048, %s646_s2, %s631_s10, %s1344_s12, %s1344_s12, %s1345_s14  }
 0x1f9 PF: > { %s1711_s5 = sld [smem:[#allocation14_spill]]  ;;  %p971_p10 = scmp.ge.s32.totalorder %s1336_s25, 2 }
 0x1fb   : > { %p965_p2 = pnand %p971_p10, %p1462_p12 }
 0x1fd   : > { %p966_p9 = pneg %p965_p2 }
 0x1ff   : > { %s660_s15 = sand.u32 1, %s1711_s5  }
 0x200   : > { %s661_s3 = scalar_lea.sflag [#allocation5], %s660_s15 }
 0x201   : > { %1279 = dma.done.wait (%p966_p9), %s661_s3, 2048  }
 0x202   : > { %1281 = vsyncadd (%p966_p9), %s661_s3, 4294965248  ;;  %s22_s25 = sadd.s32 1, %s1336_s25   ;;  %s1714_s26 = sld [smem:[#allocation15_spill]] }
 0x203   : > { %p1623_p4 = scmp.ge.s32.totalorder %s22_s25, 6   ;;  %s1715_s14 = sld [smem:[#allocation23_spill]] }
 0x204   : > { %s1716_s29 = sld [smem:[#allocation16_spill]]  ;;  %s1722_s12 = smov %s1288_s13 }
 0x205   : > { %s1717_s20 = sld [smem:[#allocation24_spill]]  ;;  %s1724_s15 = smov %s1300_s16 }
 0x206   : > { %s1718_s24 = sld [smem:[#allocation18_spill]]  ;;  %s1725_s16 = smov %s1304_s17 }
 0x207   : > { %s1719_s8 = sld [smem:[#allocation21_spill]]  ;;  %s1726_s17 = smov %s1530_s22 }
 0x208   : > { %s1720_s11 = sld [smem:[#allocation22_spill]]  ;;  %s1723_s13 = smov %s1714_s26 }
 0x209   : > { %s1727_s18 = smov %s1312_s19  ;;  %s1729_s21 = smov %s1328_s23 }
 0x20a   : > { %s1728_s19 = smov %s1716_s29  ;;  %21 = sbr.rel (!%p1623_p4) target bundleno = 16 (0x10), region = 102 }
 0x20c   : > { %s1730_s22 = smov %s1718_s24 }
 0x20d   : > { %s1731_s23 = smov %s1719_s8 }
 0x20e   : > { %s1732_s24 = smov %s1720_s11 }
 0x20f   :  { %667 = vsyncpa [#allocation4], 1 }
 0x210   :  { %669 = vsyncpa [#allocation4 + $0x1], 1 }
 0x211   :  { %670 = vsyncpa [#allocation7], 1 }
 0x212   :  { %672 = vsyncpa [#allocation7 + $0x1], 1 }
 0x213   :  { %673 = vsyncpa [#allocation5], 1 }
 0x214   :  { %675 = vsyncpa [#allocation5 + $0x1], 1 }

</bundles_post_ra>
